<compile_context>
chip_gen: v7x
topology: tpu7x:2x2x1
jax: 0.10.0
libtpu: 0.0.40
codegen_flags: <defaults>
</compile_context>

<pallas_src>
import functools

import jax
import jax.numpy as jnp
from jax.experimental import pallas as pl
from jax.experimental.pallas import tpu as pltpu


# ----------------------------------------------------------------------------
# Fused depthwise 3x3 conv + BN(inference) + ReLU kernel.
# Activation layout: rows = B*H (sublane axis), lanes = W*C (lane-dense).
# ----------------------------------------------------------------------------
def _dw_bn_relu_kernel(x_ref, k_ref, sc_ref, sh_ref, o_ref, *, H, C, rs, n_strips):
    """One output strip of rs rows of the (B*H, W*C) activation view.

    x_ref : (RB, WC)  resident block of whole images (RB = block_b * H)
    k_ref : (9, WC)   3x3 depthwise taps tiled over W, W-edge padding folded in
    sc_ref: (1, WC)   fused scale  = gamma / sqrt(var + eps)
    sh_ref: (1, WC)   fused shift  = (conv_bias - mean) * scale + beta
    o_ref : (rs, WC)  output strip j covers block rows [j*rs, j*rs + rs)
    """
    RB, WC = x_ref.shape
    zero = jnp.float32(0.0)

    if n_strips == 1:
        r0 = 0
        x = x_ref[...].astype(jnp.float32)
    else:
        r0 = pl.multiple_of(pl.program_id(1) * rs, 8)
        x = x_ref[pl.ds(r0, rs), :].astype(jnp.float32)

    def tap(i):                       # (1, WC) pre-tiled per-channel tap
        return k_ref[i:i + 1, :]

    # Column (W) neighbours via lane rolls (1 pixel == C lanes).  The wrapped
    # column is harmless: the matching tap lanes were zeroed in the glue.
    x_l = pltpu.roll(x, shift=C, axis=1)         # x[., w-1]
    x_r = pltpu.roll(x, shift=WC - C, axis=1)    # x[., w+1]

    # Contribution of each *input* row with the top / mid / bottom taps.
    band_t = x_l * tap(0) + x * tap(1) + x_r * tap(2)
    band_m = x_l * tap(3) + x * tap(4) + x_r * tap(5)
    band_b = x_l * tap(6) + x * tap(7) + x_r * tap(8)

    # Cheap (rs, 1) row bookkeeping: strip-local row and image-local row.
    row_local = jax.lax.broadcasted_iota(jnp.int32, (rs, 1), 0)
    h_im = (row_local + r0) % H

    # Row (H) neighbours via sublane rolls.  Strip-boundary rows take their
    # halo from the resident image block (8-row-aligned slices); image-boundary
    # rows are zeroed (conv zero padding), which also kills the roll wrap.
    rolled_t = pltpu.roll(band_t, shift=1, axis=0)        # band_t[r-1]
    rolled_b = pltpu.roll(band_b, shift=rs - 1, axis=0)   # band_b[r+1]
    if n_strips > 1:
        up_start = pl.multiple_of(jnp.maximum(r0 - 8, 0), 8)
        dn_start = pl.multiple_of(jnp.minimum(r0 + rs, RB - 8), 8)
        xu = x_ref[pl.ds(up_start, 8), :][7:8, :].astype(jnp.float32)  # row r0-1
        xd = x_ref[pl.ds(dn_start, 8), :][0:1, :].astype(jnp.float32)  # row r0+rs
        up_band = (pltpu.roll(xu, shift=C, axis=1) * tap(0) + xu * tap(1)
                   + pltpu.roll(xu, shift=WC - C, axis=1) * tap(2))
        dn_band = (pltpu.roll(xd, shift=C, axis=1) * tap(6) + xd * tap(7)
                   + pltpu.roll(xd, shift=WC - C, axis=1) * tap(8))
        rolled_t = jnp.where(row_local == 0, up_band, rolled_t)
        rolled_b = jnp.where(row_local == rs - 1, dn_band, rolled_b)

    acc = band_m
    acc = acc + jnp.where(h_im == 0, zero, rolled_t)
    acc = acc + jnp.where(h_im == H - 1, zero, rolled_b)

    # Fused conv bias + BatchNorm (inference) + ReLU.
    acc = acc * sc_ref[...] + sh_ref[...]
    o_ref[...] = jnp.maximum(acc, zero).astype(o_ref.dtype)


# ----------------------------------------------------------------------------
# Tiling heuristic: whole images per block, or one resident image split into
# row strips, targeting ~2 MiB blocks and >= 4 grid steps for pipelining.
# ----------------------------------------------------------------------------
def _choose_tiling(B, H, W, C, itemsize):
    WC = W * C
    img_bytes = H * WC * itemsize
    target = 2 << 20          # ~2 MiB blocks: measured near-roofline tile size
    min_steps = 4             # enough steps to pipeline / feed 2 TCs (v7x)

    if img_bytes >= target // 2 or B < min_steps:
        # Few or large images: keep one image resident, stream output strips.
        n_strips = 1
        want = max(1, -(-min_steps // max(B, 1)))   # ceil(min_steps / B)
        for s in range(min(want, H // 8), 0, -1):
            if H % s == 0 and (H // s) % 8 == 0:
                n_strips = s
                break
        return 1, n_strips

    # Many small images: pack several whole images per block.
    block_b = 1
    for d in range(1, B + 1):
        if B % d:
            continue
        if (d * H) % 8 != 0 and B // d > 1:         # (8,128) rule when grid > 1
            continue
        if d * img_bytes <= target and B // d >= min_steps:
            block_b = d
    return block_b, 1


def dw_bn_relu(x_bnc, H, W, kernel, bias, gamma, beta, mean, var,
               *, eps=1e-5, block_b=None, n_strips=None):
    """DW_bn_relu forward.  x_bnc: (B, N=H*W, C) -> (B, N, C), same dtype."""
    B, N, C = x_bnc.shape
    assert N == H * W, "sequence length must equal H*W"
    WC = W * C
    # Lane-dense layout requirement (unmasked vector stores, (8,128) tiling).
    # TODO(synk): pad C so that W*C % 128 == 0 instead of asserting, if needed.
    assert WC % 128 == 0, f"W*C={WC} must be a multiple of 128"

    in_dtype = x_bnc.dtype
    itemsize = jnp.dtype(in_dtype).itemsize

    if block_b is None and n_strips is None:
        block_b, n_strips = _choose_tiling(B, H, W, C, itemsize)
    block_b = 1 if block_b is None else int(block_b)
    n_strips = 1 if n_strips is None else int(n_strips)
    if n_strips > 1 and block_b != 1:
        raise ValueError("row strips (n_strips > 1) require block_b == 1")
    if B % block_b or H % n_strips:
        raise ValueError("block_b must divide B and n_strips must divide H")

    RB = block_b * H             # rows per (resident) input block: whole images
    rs = RB // n_strips          # rows per output strip
    grid_b = B // block_b
    if grid_b * n_strips > 1 and rs % 8 != 0:
        # Cannot satisfy the (8,128) divisibility rule with this tiling: fall
        # back to one full-array block (always legal, just unpipelined).
        block_b, n_strips = B, 1
        RB = rs = B * H
        grid_b = 1

    # (B, N, C) row-major == (B, H, W, C) row-major == (B*H, W*C): pure reshape,
    # no data movement, last axis lane-dense.
    x2 = x_bnc.reshape(B * H, WC)

    # Pre-tile the 3x3 per-channel taps over W and fold the conv's W-edge zero
    # padding into them: pixel-column 0 lanes zeroed for the x[w-1] taps (rows
    # 0,3,6), column W-1 lanes for the x[w+1] taps (rows 2,5,8).  The kernel
    # then needs no W-edge masking at all.
    k9 = jnp.tile(kernel.astype(jnp.float32).reshape(9, 1, C), (1, W, 1))
    w_idx = jnp.arange(W).reshape(1, W, 1)
    uses_left = jnp.array([1, 0, 0, 1, 0, 0, 1, 0, 0], bool).reshape(9, 1, 1)
    uses_right = jnp.array([0, 0, 1, 0, 0, 1, 0, 0, 1], bool).reshape(9, 1, 1)
    k9 = jnp.where(uses_left & (w_idx == 0), 0.0, k9)
    k9 = jnp.where(uses_right & (w_idx == W - 1), 0.0, k9)
    k9 = k9.reshape(9, WC)

    # Fold conv bias + BatchNorm running stats into one per-channel scale/shift.
    scale = gamma.astype(jnp.float32) / jnp.sqrt(var.astype(jnp.float32) + eps)
    shift = (bias.astype(jnp.float32) - mean.astype(jnp.float32)) * scale \
        + beta.astype(jnp.float32)
    sc = jnp.tile(scale.reshape(1, 1, C), (1, W, 1)).reshape(1, WC)
    sh = jnp.tile(shift.reshape(1, 1, C), (1, W, 1)).reshape(1, WC)

    # Explicit VMEM budget: double-buffered input + output blocks + constants
    # (+ slack).  Capped at 64 MiB so tiles stay legal on v7x's smaller VMEM.
    est = 2 * (RB + rs) * WC * itemsize + 2 * 11 * WC * 4 + (2 << 20)
    vmem_limit = int(min(max(est, 32 << 20), 64 << 20))

    kernel_fn = functools.partial(_dw_bn_relu_kernel, H=H, C=C, rs=rs,
                                  n_strips=n_strips)
    ns = n_strips   # captured by the output index_map

    out2 = pl.pallas_call(
        kernel_fn,
        out_shape=jax.ShapeDtypeStruct((B * H, WC), in_dtype),
        grid_spec=pltpu.PrefetchScalarGridSpec(
            num_scalar_prefetch=0,
            grid=(grid_b, n_strips),
            in_specs=[
                # Activation block = block_b whole images; its index map ignores
                # the strip axis, so it stays resident in VMEM across strips and
                # is DMA'd from HBM exactly once per image.
                pl.BlockSpec((RB, WC), lambda b, j: (b, 0)),
                pl.BlockSpec((9, WC), lambda b, j: (0, 0)),
                pl.BlockSpec((1, WC), lambda b, j: (0, 0)),
                pl.BlockSpec((1, WC), lambda b, j: (0, 0)),
            ],
            out_specs=pl.BlockSpec((rs, WC), lambda b, j: (b * ns + j, 0)),
        ),
        compiler_params=pltpu.CompilerParams(
            dimension_semantics=("parallel", "parallel"),
            vmem_limit_bytes=vmem_limit),
    )(x2, k9, sc, sh)

    return out2.reshape(B, N, C)


# ----------------------------------------------------------------------------
# Pure-JAX reference (eval-mode BatchNorm, zero-padded depthwise 3x3 conv).
# ----------------------------------------------------------------------------
def dw_bn_relu_reference(x_bnc, H, W, kernel, bias, gamma, beta, mean, var,
                         eps=1e-5):
    B, N, C = x_bnc.shape
    x = x_bnc.reshape(B, H, W, C).astype(jnp.float32)
    xp = jnp.pad(x, ((0, 0), (1, 1), (1, 1), (0, 0)))
    acc = jnp.zeros((B, H, W, C), jnp.float32)
    for dh in range(3):
        for dw in range(3):
            acc = acc + xp[:, dh:dh + H, dw:dw + W, :] * kernel[dh, dw, :]
    acc = acc + bias
    acc = (acc - mean) / jnp.sqrt(var + eps) * gamma + beta
    return jnp.maximum(acc, 0.0).reshape(B, N, C)


if __name__ == "__main__":
    def make_case(key, B, C, H, W):
        ks = jax.random.split(key, 7)
        x = jax.random.normal(ks[0], (B, H * W, C), jnp.float32)
        kern = jax.random.normal(ks[1], (3, 3, C), jnp.float32) * jnp.sqrt(2.0 / 9.0)
        bias = 0.05 * jax.random.normal(ks[2], (C,), jnp.float32)
        gamma = 1.0 + 0.1 * jax.random.normal(ks[3], (C,), jnp.float32)
        beta = 0.1 * jax.random.normal(ks[4], (C,), jnp.float32)
        mean = 0.1 * jax.random.normal(ks[5], (C,), jnp.float32)
        var = 1.0 + 0.1 * jnp.abs(jax.random.normal(ks[6], (C,), jnp.float32))
        return x, kern, bias, gamma, beta, mean, var

    @functools.partial(jax.jit, static_argnames=("H", "W", "block_b", "n_strips"))
    def fwd(x, kernel, bias, gamma, beta, mean, var, *, H, W,
            block_b=None, n_strips=None):
        return dw_bn_relu(x, H, W, kernel, bias, gamma, beta, mean, var,
                          block_b=block_b, n_strips=n_strips)

    k1, k2 = jax.random.split(jax.random.PRNGKey(0))

    # Case 1: B=2, C=32, 16x16 -> H-strip path (resident image, 2 output strips
    # per image, grid=(2,2)); exercises the halo loads at strip boundaries.
    x, kern, b, g, bt, m, v = make_case(k1, B=2, C=32, H=16, W=16)
    out = jax.block_until_ready(fwd(x, kern, b, g, bt, m, v, H=16, W=16,
                                    block_b=1, n_strips=2))
    ref = dw_bn_relu_reference(x, 16, 16, kern, b, g, bt, m, v)
    err = float(jnp.max(jnp.abs(out - ref)))
    assert out.shape == x.shape and out.dtype == x.dtype, "case1 shape/dtype"
    assert err < 1e-4, f"case1 max abs err {err}"

    # Case 2: B=4, C=32, 8x8 -> multi-image-block path (block_b=2, grid=(2,1));
    # exercises the cross-image zero-halo masks inside one block.
    x2, kern2, b2, g2, bt2, m2, v2 = make_case(k2, B=4, C=32, H=8, W=8)
    out2 = jax.block_until_ready(fwd(x2, kern2, b2, g2, bt2, m2, v2, H=8, W=8,
                                     block_b=2, n_strips=1))
    ref2 = dw_bn_relu_reference(x2, 8, 8, kern2, b2, g2, bt2, m2, v2)
    err2 = float(jnp.max(jnp.abs(out2 - ref2)))
    assert err2 < 1e-4, f"case2 max abs err {err2}"

    # Case 3: bf16 activations (halved HBM traffic on v5e/v6e), f32 accumulation
    # inside the kernel, auto-chosen tiling.
    xb = x.astype(jnp.bfloat16)
    out3 = jax.block_until_ready(fwd(xb, kern, b, g, bt, m, v, H=16, W=16))
    ref3 = dw_bn_relu_reference(xb.astype(jnp.float32), 16, 16,
                                kern, b, g, bt, m, v)
    err3 = float(jnp.max(jnp.abs(out3.astype(jnp.float32) - ref3)))
    assert out3.dtype == jnp.bfloat16 and err3 < 1e-1, f"case3 max abs err {err3}"

    print("KERNEL_OK")
</pallas_src>

<mosaic_0001>
module attributes {stable_mosaic.version = 11 : i64} {
  func.func @_dw_bn_relu_kernel(%arg0: i32, %arg1: i32, %arg2: memref<16x512xf32, #tpu.memory_space<vmem>>, %arg3: memref<9x512xf32, #tpu.memory_space<vmem>>, %arg4: memref<1x512xf32, #tpu.memory_space<vmem>>, %arg5: memref<1x512xf32, #tpu.memory_space<vmem>>, %arg6: memref<8x512xf32, #tpu.memory_space<vmem>>) attributes {dimension_semantics = [#tpu.dimension_semantics<parallel>, #tpu.dimension_semantics<parallel>], iteration_bounds = array<i64: 2, 2>, scalar_prefetch = 0 : i64, scratch_operands = 0 : i64, tpu.core_type = #tpu.core_type<tc>, window_params = [{transform_indices = @transform_0, window_bounds = array<i64: 16, 512>}, {pipeline_mode = #tpu.pipeline_mode<synchronous>, transform_indices = @transform_1, window_bounds = array<i64: 9, 512>}, {pipeline_mode = #tpu.pipeline_mode<synchronous>, transform_indices = @transform_2, window_bounds = array<i64: 1, 512>}, {pipeline_mode = #tpu.pipeline_mode<synchronous>, transform_indices = @transform_3, window_bounds = array<i64: 1, 512>}, {transform_indices = @transform_4, window_bounds = array<i64: 8, 512>}]} {
    %c8_i32 = arith.constant 8 : i32
    %0 = arith.muli %arg1, %c8_i32 : i32
    %1 = tpu.assume_multiple %0, 8 : i32
    %2 = arith.index_cast %1 : i32 to index
    %c0 = arith.constant 0 : index
    %3 = vector.load %arg2[%2, %c0] : memref<16x512xf32, #tpu.memory_space<vmem>>, vector<8x512xf32>
    %c32_i32 = arith.constant 32 : i32
    %4 = tpu.dynamic_rotate %3 by %c32_i32 dim 1 : vector<8x512xf32>, i32 -> vector<8x512xf32>
    %c480_i32 = arith.constant 480 : i32
    %5 = tpu.dynamic_rotate %3 by %c480_i32 dim 1 : vector<8x512xf32>, i32 -> vector<8x512xf32>
    %c0_0 = arith.constant 0 : index
    %c0_1 = arith.constant 0 : index
    %6 = vector.load %arg3[%c0_0, %c0_1] : memref<9x512xf32, #tpu.memory_space<vmem>>, vector<1x512xf32>
    %7 = vector.broadcast %6 : vector<1x512xf32> to vector<8x512xf32>
    %8 = arith.mulf %4, %7 : vector<8x512xf32>
    %c1 = arith.constant 1 : index
    %c0_2 = arith.constant 0 : index
    %9 = vector.load %arg3[%c1, %c0_2] : memref<9x512xf32, #tpu.memory_space<vmem>>, vector<1x512xf32>
    %10 = vector.broadcast %9 : vector<1x512xf32> to vector<8x512xf32>
    %11 = arith.mulf %3, %10 : vector<8x512xf32>
    %12 = arith.addf %8, %11 : vector<8x512xf32>
    %c2 = arith.constant 2 : index
    %c0_3 = arith.constant 0 : index
    %13 = vector.load %arg3[%c2, %c0_3] : memref<9x512xf32, #tpu.memory_space<vmem>>, vector<1x512xf32>
    %14 = vector.broadcast %13 : vector<1x512xf32> to vector<8x512xf32>
    %15 = arith.mulf %5, %14 : vector<8x512xf32>
    %16 = arith.addf %12, %15 : vector<8x512xf32>
    %c3 = arith.constant 3 : index
    %c0_4 = arith.constant 0 : index
    %17 = vector.load %arg3[%c3, %c0_4] : memref<9x512xf32, #tpu.memory_space<vmem>>, vector<1x512xf32>
    %18 = vector.broadcast %17 : vector<1x512xf32> to vector<8x512xf32>
    %19 = arith.mulf %4, %18 : vector<8x512xf32>
    %c4 = arith.constant 4 : index
    %c0_5 = arith.constant 0 : index
    %20 = vector.load %arg3[%c4, %c0_5] : memref<9x512xf32, #tpu.memory_space<vmem>>, vector<1x512xf32>
    %21 = vector.broadcast %20 : vector<1x512xf32> to vector<8x512xf32>
    %22 = arith.mulf %3, %21 : vector<8x512xf32>
    %23 = arith.addf %19, %22 : vector<8x512xf32>
    %c5 = arith.constant 5 : index
    %c0_6 = arith.constant 0 : index
    %24 = vector.load %arg3[%c5, %c0_6] : memref<9x512xf32, #tpu.memory_space<vmem>>, vector<1x512xf32>
    %25 = vector.broadcast %24 : vector<1x512xf32> to vector<8x512xf32>
    %26 = arith.mulf %5, %25 : vector<8x512xf32>
    %27 = arith.addf %23, %26 : vector<8x512xf32>
    %c6 = arith.constant 6 : index
    %c0_7 = arith.constant 0 : index
    %28 = vector.load %arg3[%c6, %c0_7] : memref<9x512xf32, #tpu.memory_space<vmem>>, vector<1x512xf32>
    %29 = vector.broadcast %28 : vector<1x512xf32> to vector<8x512xf32>
    %30 = arith.mulf %4, %29 : vector<8x512xf32>
    %c7 = arith.constant 7 : index
    %c0_8 = arith.constant 0 : index
    %31 = vector.load %arg3[%c7, %c0_8] : memref<9x512xf32, #tpu.memory_space<vmem>>, vector<1x512xf32>
    %32 = vector.broadcast %31 : vector<1x512xf32> to vector<8x512xf32>
    %33 = arith.mulf %3, %32 : vector<8x512xf32>
    %34 = arith.addf %30, %33 : vector<8x512xf32>
    %c8 = arith.constant 8 : index
    %c0_9 = arith.constant 0 : index
    %35 = vector.load %arg3[%c8, %c0_9] : memref<9x512xf32, #tpu.memory_space<vmem>>, vector<1x512xf32>
    %36 = vector.broadcast %35 : vector<1x512xf32> to vector<8x512xf32>
    %37 = arith.mulf %5, %36 : vector<8x512xf32>
    %38 = arith.addf %34, %37 : vector<8x512xf32>
    %39 = tpu.iota {dimensions = array<i32: 0>} : vector<8x1xi32>
    %40 = vector.broadcast %1 : i32 to vector<8x1xi32>
    %41 = arith.addi %39, %40 : vector<8x1xi32>
    %c16_i32 = arith.constant 16 : i32
    %c0_i32 = arith.constant 0 : i32
    %42 = arith.cmpi eq, %c16_i32, %c0_i32 : i32
    %c1_i32 = arith.constant 1 : i32
    %43 = arith.select %42, %c1_i32, %c16_i32 : i32
    %44 = vector.broadcast %43 : i32 to vector<8x1xi32>
    %45 = arith.remsi %41, %44 : vector<8x1xi32>
    %c0_i32_10 = arith.constant 0 : i32
    %46 = vector.broadcast %c0_i32_10 : i32 to vector<8x1xi32>
    %47 = arith.cmpi ne, %45, %46 : vector<8x1xi32>
    %c0_i32_11 = arith.constant 0 : i32
    %48 = vector.broadcast %c0_i32_11 : i32 to vector<8x1xi32>
    %49 = arith.cmpi slt, %45, %48 : vector<8x1xi32>
    %c0_i32_12 = arith.constant 0 : i32
    %50 = arith.cmpi slt, %43, %c0_i32_12 : i32
    %51 = vector.broadcast %50 : i1 to vector<8x1xi1>
    %52 = vector.broadcast %51 : vector<8x1xi1> to vector<8x1xi1>
    %53 = arith.xori %49, %52 : vector<8x1xi1>
    %54 = arith.andi %53, %47 : vector<8x1xi1>
    %55 = vector.broadcast %43 : i32 to vector<8x1xi32>
    %56 = arith.addi %45, %55 : vector<8x1xi32>
    %57 = arith.select %54, %56, %45 : vector<8x1xi1>, vector<8x1xi32>
    %c1_i32_13 = arith.constant 1 : i32
    %58 = tpu.dynamic_rotate %16 by %c1_i32_13 dim 0 : vector<8x512xf32>, i32 -> vector<8x512xf32>
    %c7_i32 = arith.constant 7 : i32
    %59 = tpu.dynamic_rotate %38 by %c7_i32 dim 0 : vector<8x512xf32>, i32 -> vector<8x512xf32>
    %c8_i32_14 = arith.constant 8 : i32
    %60 = arith.subi %1, %c8_i32_14 : i32
    %c0_i32_15 = arith.constant 0 : i32
    %61 = arith.maxsi %60, %c0_i32_15 : i32
    %62 = tpu.assume_multiple %61, 8 : i32
    %c8_i32_16 = arith.constant 8 : i32
    %63 = arith.addi %1, %c8_i32_16 : i32
    %c8_i32_17 = arith.constant 8 : i32
    %64 = arith.minsi %63, %c8_i32_17 : i32
    %65 = tpu.assume_multiple %64, 8 : i32
    %66 = arith.index_cast %62 : i32 to index
    %c0_18 = arith.constant 0 : index
    %67 = vector.load %arg2[%66, %c0_18] : memref<16x512xf32, #tpu.memory_space<vmem>>, vector<8x512xf32>
    %68 = vector.extract_strided_slice %67 {offsets = [7, 0], sizes = [1, 512], strides = [1, 1]} : vector<8x512xf32> to vector<1x512xf32>
    %69 = arith.index_cast %65 : i32 to index
    %c0_19 = arith.constant 0 : index
    %70 = vector.load %arg2[%69, %c0_19] : memref<16x512xf32, #tpu.memory_space<vmem>>, vector<8x512xf32>
    %71 = vector.extract_strided_slice %70 {offsets = [0, 0], sizes = [1, 512], strides = [1, 1]} : vector<8x512xf32> to vector<1x512xf32>
    %c32_i32_20 = arith.constant 32 : i32
    %72 = tpu.dynamic_rotate %68 by %c32_i32_20 dim 1 : vector<1x512xf32>, i32 -> vector<1x512xf32>
    %c0_21 = arith.constant 0 : index
    %c0_22 = arith.constant 0 : index
    %73 = vector.load %arg3[%c0_21, %c0_22] : memref<9x512xf32, #tpu.memory_space<vmem>>, vector<1x512xf32>
    %74 = arith.mulf %72, %73 : vector<1x512xf32>
    %c1_23 = arith.constant 1 : index
    %c0_24 = arith.constant 0 : index
    %75 = vector.load %arg3[%c1_23, %c0_24] : memref<9x512xf32, #tpu.memory_space<vmem>>, vector<1x512xf32>
    %76 = arith.mulf %68, %75 : vector<1x512xf32>
    %77 = arith.addf %74, %76 : vector<1x512xf32>
    %c480_i32_25 = arith.constant 480 : i32
    %78 = tpu.dynamic_rotate %68 by %c480_i32_25 dim 1 : vector<1x512xf32>, i32 -> vector<1x512xf32>
    %c2_26 = arith.constant 2 : index
    %c0_27 = arith.constant 0 : index
    %79 = vector.load %arg3[%c2_26, %c0_27] : memref<9x512xf32, #tpu.memory_space<vmem>>, vector<1x512xf32>
    %80 = arith.mulf %78, %79 : vector<1x512xf32>
    %81 = arith.addf %77, %80 : vector<1x512xf32>
    %c32_i32_28 = arith.constant 32 : i32
    %82 = tpu.dynamic_rotate %71 by %c32_i32_28 dim 1 : vector<1x512xf32>, i32 -> vector<1x512xf32>
    %c6_29 = arith.constant 6 : index
    %c0_30 = arith.constant 0 : index
    %83 = vector.load %arg3[%c6_29, %c0_30] : memref<9x512xf32, #tpu.memory_space<vmem>>, vector<1x512xf32>
    %84 = arith.mulf %82, %83 : vector<1x512xf32>
    %c7_31 = arith.constant 7 : index
    %c0_32 = arith.constant 0 : index
    %85 = vector.load %arg3[%c7_31, %c0_32] : memref<9x512xf32, #tpu.memory_space<vmem>>, vector<1x512xf32>
    %86 = arith.mulf %71, %85 : vector<1x512xf32>
    %87 = arith.addf %84, %86 : vector<1x512xf32>
    %c480_i32_33 = arith.constant 480 : i32
    %88 = tpu.dynamic_rotate %71 by %c480_i32_33 dim 1 : vector<1x512xf32>, i32 -> vector<1x512xf32>
    %c8_34 = arith.constant 8 : index
    %c0_35 = arith.constant 0 : index
    %89 = vector.load %arg3[%c8_34, %c0_35] : memref<9x512xf32, #tpu.memory_space<vmem>>, vector<1x512xf32>
    %90 = arith.mulf %88, %89 : vector<1x512xf32>
    %91 = arith.addf %87, %90 : vector<1x512xf32>
    %c0_i32_36 = arith.constant 0 : i32
    %92 = vector.broadcast %c0_i32_36 : i32 to vector<8x1xi32>
    %93 = arith.cmpi eq, %39, %92 : vector<8x1xi32>
    %94 = vector.shape_cast %93 : vector<8x1xi1> to vector<8x1xi1>
    %95 = vector.broadcast %94 : vector<8x1xi1> to vector<8x512xi1>
    %96 = vector.shape_cast %81 : vector<1x512xf32> to vector<1x512xf32>
    %97 = vector.broadcast %96 : vector<1x512xf32> to vector<8x512xf32>
    %98 = arith.select %95, %97, %58 : vector<8x512xi1>, vector<8x512xf32>
    %c7_i32_37 = arith.constant 7 : i32
    %99 = vector.broadcast %c7_i32_37 : i32 to vector<8x1xi32>
    %100 = arith.cmpi eq, %39, %99 : vector<8x1xi32>
    %101 = vector.shape_cast %100 : vector<8x1xi1> to vector<8x1xi1>
    %102 = vector.broadcast %101 : vector<8x1xi1> to vector<8x512xi1>
    %103 = vector.shape_cast %91 : vector<1x512xf32> to vector<1x512xf32>
    %104 = vector.broadcast %103 : vector<1x512xf32> to vector<8x512xf32>
    %105 = arith.select %102, %104, %59 : vector<8x512xi1>, vector<8x512xf32>
    %c0_i32_38 = arith.constant 0 : i32
    %106 = vector.broadcast %c0_i32_38 : i32 to vector<8x1xi32>
    %107 = arith.cmpi eq, %57, %106 : vector<8x1xi32>
    %cst = arith.constant 0.000000e+00 : f32
    %108 = vector.shape_cast %107 : vector<8x1xi1> to vector<8x1xi1>
    %109 = vector.broadcast %108 : vector<8x1xi1> to vector<8x512xi1>
    %110 = vector.broadcast %cst : f32 to vector<8x512xf32>
    %111 = arith.select %109, %110, %98 : vector<8x512xi1>, vector<8x512xf32>
    %112 = arith.addf %27, %111 : vector<8x512xf32>
    %c15_i32 = arith.constant 15 : i32
    %113 = vector.broadcast %c15_i32 : i32 to vector<8x1xi32>
    %114 = arith.cmpi eq, %57, %113 : vector<8x1xi32>
    %cst_39 = arith.constant 0.000000e+00 : f32
    %115 = vector.shape_cast %114 : vector<8x1xi1> to vector<8x1xi1>
    %116 = vector.broadcast %115 : vector<8x1xi1> to vector<8x512xi1>
    %117 = vector.broadcast %cst_39 : f32 to vector<8x512xf32>
    %118 = arith.select %116, %117, %105 : vector<8x512xi1>, vector<8x512xf32>
    %119 = arith.addf %112, %118 : vector<8x512xf32>
    %c0_40 = arith.constant 0 : index
    %c0_41 = arith.constant 0 : index
    %120 = vector.load %arg4[%c0_40, %c0_41] : memref<1x512xf32, #tpu.memory_space<vmem>>, vector<1x512xf32>
    %121 = vector.broadcast %120 : vector<1x512xf32> to vector<8x512xf32>
    %122 = arith.mulf %119, %121 : vector<8x512xf32>
    %c0_42 = arith.constant 0 : index
    %c0_43 = arith.constant 0 : index
    %123 = vector.load %arg5[%c0_42, %c0_43] : memref<1x512xf32, #tpu.memory_space<vmem>>, vector<1x512xf32>
    %124 = vector.broadcast %123 : vector<1x512xf32> to vector<8x512xf32>
    %125 = arith.addf %122, %124 : vector<8x512xf32>
    %cst_44 = arith.constant 0.000000e+00 : f32
    %126 = vector.broadcast %cst_44 : f32 to vector<8x512xf32>
    %127 = arith.maximumf %125, %126 : vector<8x512xf32>
    %c0_45 = arith.constant 0 : index
    %c0_46 = arith.constant 0 : index
    %128 = vector.load %arg6[%c0_45, %c0_46] : memref<8x512xf32, #tpu.memory_space<vmem>>, vector<8x512xf32>
    tpu.vector_store %arg6[%c0_45, %c0_46], %127 {strides = array<i32>} : memref<8x512xf32, #tpu.memory_space<vmem>>, vector<8x512xf32>,
    return
  }
  func.func @transform_0(%arg0: i32, %arg1: i32) -> (i32, i32) {
    %c0_i32 = arith.constant 0 : i32
    %c0_i32_0 = arith.constant 0 : i32
    return %arg0, %c0_i32 : i32, i32
  }
  func.func @transform_1(%arg0: i32, %arg1: i32) -> (i32, i32) {
    %c0_i32 = arith.constant 0 : i32
    %c0_i32_0 = arith.constant 0 : i32
    %c0_i32_1 = arith.constant 0 : i32
    return %c0_i32, %c0_i32_0 : i32, i32
  }
  func.func @transform_2(%arg0: i32, %arg1: i32) -> (i32, i32) {
    %c0_i32 = arith.constant 0 : i32
    %c0_i32_0 = arith.constant 0 : i32
    %c0_i32_1 = arith.constant 0 : i32
    return %c0_i32, %c0_i32_0 : i32, i32
  }
  func.func @transform_3(%arg0: i32, %arg1: i32) -> (i32, i32) {
    %c0_i32 = arith.constant 0 : i32
    %c0_i32_0 = arith.constant 0 : i32
    %c0_i32_1 = arith.constant 0 : i32
    return %c0_i32, %c0_i32_0 : i32, i32
  }
  func.func @transform_4(%arg0: i32, %arg1: i32) -> (i32, i32) {
    %c2_i32 = arith.constant 2 : i32
    %0 = arith.muli %arg0, %c2_i32 : i32
    %1 = arith.addi %0, %arg1 : i32
    %c0_i32 = arith.constant 0 : i32
    %c0_i32_0 = arith.constant 0 : i32
    return %1, %c0_i32 : i32, i32
  }
}

</mosaic_0001>

<bundles_post_ra>
// kernel: fwd.1
= control target key start
LH: loop header
LB: loop body
LE: loop exit
PB: predicated region body
PF: predicated region fallthrough
CT: control target
= control target key end

     0   :  { %s1042_s15 = smov 0   ;;  %s1044_s16 = smov 0   ;;  %s1617_s0 = inlined_call_operand.vmem [shape: f32[32,512], index: 0, kind: input, shape index: {}]   ;;  %s1618_s1 = inlined_call_operand.vmem [shape: f32[9,512], index: 1, kind: input, shape index: {}]   ;;  %s1619_s2 = inlined_call_operand.vmem [shape: f32[1,512], index: 2, kind: input, shape index: {}]   ;;  %s1620_s3 = inlined_call_operand.vmem [shape: f32[1,512], index: 3, kind: input, shape index: {}]   ;;  %s1621_s4 = inlined_call_operand.vmem [shape: f32[32,512], index: 4, kind: output, shape index: {}]  }
   0x1   :  { %s1046_s17 = smov 0   ;;  %s1048_s18 = smov 0  }
   0x2   :  { %s1050_s19 = smov 0  }
   0x3 LB: > { %s23_s20 = sadd.s32 1, %s1005_s17  ;;  %s26_s21 = sadd.s32 1, %s1009_s18  ;;  %s1013_s19 = sphi %s1050_s19, %s14_s19   ;;  %s1009_s18 = sphi %s1048_s18, %s1654_s18   ;;  %s1005_s17 = sphi %s1046_s17, %s1653_s17   ;;  %s1001_s16 = sphi %s1044_s16, %s1652_s16   ;;  %s997_s15 = sphi %s1042_s15, %s1651_s15  }
   0x4   : > { %p24_p0 = scmp.ge.s32.totalorder %s23_s20, 2  ;;  %p902_p1 = scmp.ge.s32.totalorder %s1013_s19, 1 }
   0x5   : > { %p180_p2 = scmp.lt.s32.totalorder %s1013_s19, 5 }
   0x6   : > { %s1656_s20 = smov (%p24_p0, %s23_s20), 0  ;;  %s1658_s21 = smov (!%p24_p0, %s26_s21), %s1009_s18 }
   0x7   : > { %p181_p3 = pnand %p902_p1, %p180_p2  ;;  %p28_p4 = scmp.ge.s32.totalorder %s1658_s21, 2 }
   0x9   : > { %s1660_s21 = smov (%p28_p4, %s1658_s21), 0  ;;  %184 = sbr.rel (%p181_p3) target bundleno = 203 (0xcb), region = 36 }
  0x10   : > { %s1074_s22 = sshll.u32 %s1001_s16, 1  ;;  %s1077_s23 = sshll.u32 %s997_s15, 3  ;;  %v243_v16 = vlaneseq  ;;  %v912_v23 = vld [vmem:[%s1618_s1 + $0x1] ss:$8 sm:$0xf] }
  0x11   : > { %p210_p5 = scmp.lt.s32.totalorder %s1074_s22, 3  ;;  %s226_s24 = sshra.s32 %s1077_s23, 3  ;;  %v531_v17 = vstv %s1077_s23  ;;  %v918_v27 = vld [vmem:[%s1618_s1 + $0x7] ss:$8 sm:$0xf] }
  0x12   : > { %s930_s27 = sshll.u32 %s226_s24, 5  ;;  %s921_s6 = sadd.s32 4294967288, %s1077_s23  ;;  %v1149_v18 = vshrl.u32 %v243_v16, 7  ;;  %v1174_v28 = vand.u32 127, %v243_v16 }
  0x13   : > { %s211_s25 = scalar_select %p210_p5, %s1074_s22, 3  ;;  %v915_v29 = vld [vmem:[%s1618_s1 + $0x4] ss:$8 sm:$0xf] }
  0x14   : > { %s1015_s7 = smov 32   ;;  %p554_p6 = scmp.gt.s32.totalorder %s921_s6, 0  ;;  %v1152_v19 = vadd.s32 %v531_v17, %v1149_v18  ;;  %v1156_v21 = vsub.s32 3, %v1149_v18  ;;  %v1159_v22 = vsub.s32 1, %v1149_v18  ;;  %v1165_v24 = vsub.s32 0, %v1149_v18 }
  0x15   : > { %s928_s26 = sshll.u32 %s211_s25, 5  ;;  %s556_s11 = sadd.s32 8, %s1077_s23  ;;  %v1169_v26 = vsub.s32 2, %v1149_v18  ;;  %v263_v33 = vld [vmem:[%s1618_s1] ss:$8 sm:$0xf] }
  0x16   : > { %s1085_s30 = scalar_lea.vmem %s1617_s0, %s928_s26  ;;  %s1662_s6 = smov (!%p554_p6, %s921_s6), 0  ;;  %v534_v20 = vsub.s32 0, %v1152_v19  ;;  %v307_v30 = vrot.slane %v912_v23, %v1156_v21  ;;  %v299_v34 = vrot.slane %v912_v23, %v1159_v22  ;;  %v295_v35 = vrot.slane %v912_v23, %v1165_v24  ;;  %v1198_v38 = vld [vmem:[%s1618_s1 + $0x3] ss:$8 sm:$0xf] }
  0x17   : > { %s230_s5 = scalar_lea.vmem %s1085_s30, %s930_s27  ;;  %s559_s8 = sshra.s32 %s1662_s6, 3  ;;  %v1190_v36 = vrot.slane %v918_v27, %v1165_v24  ;;  %v1193_v37 = vrot.slane %v918_v27, %v1156_v21  ;;  %v917_v39 = vld [vmem:[%s1618_s1 + $0x6] ss:$8 sm:$0xf]  ;;  %v303_v41 = vrot.slane %v912_v23, %v1169_v26  ;;  %vm245_vm0 = vcmp.lt.s32.totalorder %v1174_v28, 32 }
  0x18   : > { %v1088_v0 = vld [vmem:[%s230_s5 + $0x10] sm:$0xff]  ;;  %v1090_v1 = vld [vmem:[%s230_s5] sm:$0xff]  ;;  %v1097_v2 = vld [vmem:[%s230_s5 + $0x18] sm:$0xff]  ;;  %s931_s9 = sshll.u32 %s559_s8, 5  ;;  %p557_p7 = scmp.lt.s32.totalorder %s556_s11, 8  ;;  %v920_v25 = vmin.u32 %v534_v20, %v1152_v19  ;;  %v384_v42 = vrot.slane %v915_v29, %v1165_v24  ;;  %v396_v43 = vrot.slane %v915_v29, %v1156_v21  ;;  %v1208_v44 = vrot.slane %v918_v27, %v1159_v22 }
  0x19   : > { %239 = vrot.lane.b32.xlu1 %v1088_v0, %s1015_s7  ;;  %235 = vrot.lane.b32.xlu0 %v1090_v1, %s1015_s7  ;;  %v1099_v3 = vld [vmem:[%s230_s5 + $0x8] sm:$0xff]  ;;  %s563_s10 = scalar_lea.vmem %s1085_s30, %s931_s9  ;;  %s1016_s12 = smov 96   ;;  %v1211_v45 = vrot.slane %v918_v27, %v1169_v26  ;;  %v1214_v46 = vrot.slane %v263_v33, %v1165_v24  ;;  %v1217_v47 = vrot.slane %v263_v33, %v1156_v21  ;;  %vm533_vm1 = vcmp.lt.s32.totalorder %v1152_v19, 0 }
  0x1a   : > { %v1106_v4 = vld [vmem:[%s563_s10 + $0x8] sm:$0xff]  ;;  %v1108_v5 = vld [vmem:[%s563_s10] sm:$0xff]  ;;  %v1110_v6 = vld [vmem:[%s563_s10 + $0x18] sm:$0xff]  ;;  %s1664_s11 = smov (!%p557_p7, %s556_s11), 8  ;;  %v537_v40 = vand.u32 15, %v920_v25  ;;  %v1220_v48 = vmul.f32 %v307_v30, %v1097_v2  ;;  %v1227_v51 = vrot.slane %v917_v39, %v1165_v24  ;;  %v1230_v54 = vrot.slane %v917_v39, %v1156_v21 }
  0x1b   : > { %v582_v7 = vrot.slane %v1106_v4, 7  ;;  %v581_v8 = vrot.slane %v1108_v5, 7  ;;  %v1114_v9 = vld [vmem:[%s563_s10 + $0x10] sm:$0xff]  ;;  %v584_v10 = vrot.slane %v1110_v6, 7  ;;  %s568_s13 = sshra.s32 %s1664_s11, 3  ;;  %1625 = vst [vmem:[#allocation3_spill] sm:$0xff] %v1211_v45  ;;  %v1234_v55 = vmul.f32 %v1193_v37, %v1097_v2 }
  0x1c   : > { %v583_v11 = vrot.slane %v1114_v9, 7  ;;  %s932_s14 = sshll.u32 %s568_s13, 5  ;;  %v1237_v56 = vmul.f32 %v295_v35, %v1090_v1  ;;  %v1241_v57 = vmul.f32 %v1190_v36, %v1090_v1  ;;  %v1244_v58 = vmul.f32 %v396_v43, %v1097_v2  ;;  %v1286_v20 = vld [vmem:[%s1618_s1 + $0x5] ss:$8 sm:$0xf] }
  0x1d   : > { %241 = vrot.lane.b32.xlu1 %v1097_v2, %s1015_s7  ;;  %237 = vrot.lane.b32.xlu0 %v1099_v3, %s1015_s7  ;;  %s572_s16 = scalar_lea.vmem %s1085_s30, %s932_s14  ;;  %1626 = vst [vmem:[#allocation4_spill] sm:$0xff] %v1234_v55  ;;  %v1247_v59 = vmul.f32 %v384_v42, %v1090_v1  ;;  %v1250_v60 = vrot.slane %v263_v33, %v1159_v22  ;;  %v538_v61 = vsub.s32 0, %v537_v40  ;;  %v919_v23 = vld [vmem:[%s1618_s1 + $0x20] ss:$8 sm:$0xf]  ;;  %vm258_vm2 = vcmp.lt.s32.totalorder %v1174_v28, 96 }
  0x1e   : > { %v1128_v12 = vld [vmem:[%s572_s16 + $0x8] sm:$0xff]  ;;  %v1130_v13 = vld [vmem:[%s572_s16] sm:$0xff]  ;;  %v1136_v14 = vld [vmem:[%s572_s16 + $0x18] sm:$0xff]  ;;  %v1253_v62 = vrot.slane %v263_v33, %v1169_v26  ;;  %v388_v63 = vrot.slane %v915_v29, %v1159_v22  ;;  %v1278_v17 = vrot.slane %v917_v39, %v1159_v22  ;;  %v1292_v25 = vmul.f32 %v1110_v6, %v307_v30 }
  0x1f   : > { %v1138_v15 = vld [vmem:[%s572_s16 + $0x10] sm:$0xff]  ;;  %v1295_v27 = vmul.f32 %v1114_v9, %v303_v41  ;;  %v1311_v6 = vmul.f32 %v1211_v45, %v1088_v0  ;;  %v1369_v49 = vmul.f32 %v1130_v13, %v1190_v36  ;;  %v1631_v30 = vrot.slane %v1198_v38, %v1165_v24  ;;  %s1527_s16 = sadd.s32 %s997_s15, %s1074_s22 }
  0x20   : > { %1624 = vst [vmem:[#allocation2_spill] sm:$0xff] %v1138_v15  ;;  %vm689_vm6 = vcmp.eq.s32.totalorder %v1149_v18, 0  ;;  %vm712_vm8 = vcmp.eq.s32.totalorder %v1149_v18, 7  ;;  %p218_p8 = scmp.lt.s32.totalorder %s1527_s16, 3 }
  0x21   : > { %591 = vrot.lane.b32.xlu1 %v582_v7, %s1015_s7  ;;  %589 = vrot.lane.b32.xlu0 %v581_v8, %s1015_s7  ;;  %1628 = vst [vmem:[#allocation6_spill] sm:$0xff] %v1311_v6  ;;  %1630 = vst [vmem:[#allocation8_spill] sm:$0xff] %v1369_v49 }
  0x22   : > { %s1666_s16 = smov (!%p218_p8, %s1527_s16), 3 }
  0x23   : > { %s929_s23 = sshll.u32 %s1666_s16, 5 }
  0x24   : > { %s222_s28 = scalar_lea.vmem %s1621_s4, %s929_s23 }
  0x25   : > { %595 = vrot.lane.b32.xlu1 %v584_v10, %s1015_s7  ;;  %593 = vrot.lane.b32.xlu0 %v583_v11, %s1015_s7 }
  0x29   : > { %252 = vrot.lane.b32.xlu1 %v1099_v3, %s1016_s12  ;;  %250 = vrot.lane.b32.xlu0 %v1090_v1, %s1016_s12  ;;  %v1265_v1 = vmul.f32 %v299_v34, %v1099_v3 }
  0x2d   : > { %256 = vrot.lane.b32.xlu1 %v1097_v2, %s1016_s12  ;;  %254 = vrot.lane.b32.xlu0 %v1088_v0, %s1016_s12  ;;  %v1262_v2 = vmul.f32 %v1108_v5, %v295_v35  ;;  %v1281_v5 = vrot.slane %v917_v39, %v1169_v26  ;;  %v539_v35 = vsel %vm533_vm1, %v538_v61, %v537_v40 }
  0x2e   : > { %v1304_v39 = vmul.f32 %v388_v63, %v1099_v3  ;;  %v1322_v40 = vrot.slane %v919_v23, %v1165_v24  ;;  %vm540_vm3 = vcmp.ne.s32.totalorder %v539_v35, 0  ;;  %vm541_vm4 = vcmp.lt.s32.totalorder %v539_v35, 0 }
  0x2f   : > { %v543_v43 = vadd.s32 16, %v539_v35  ;;  %vm542_vm5 = vmand %vm541_vm4, %vm540_vm3 }
  0x31   : > { %627 = vrot.lane.b32.xlu1 %v582_v7, %s1016_s12  ;;  %625 = vrot.lane.b32.xlu0 %v581_v8, %s1016_s12  ;;  %v392_v7 = vrot.slane %v915_v29, %v1169_v26  ;;  %v1259_v8 = vmul.f32 %v1106_v4, %v299_v34  ;;  %v1299_v29 = vmul.f32 %v1208_v44, %v1099_v3 }
  0x32   : > { %v415_v3 = vrot.slane %v1286_v20, %v1165_v24  ;;  %v1338_v4 = vrot.slane %v919_v23, %v1156_v21  ;;  %v1386_v36 = vsel %vm542_vm5, %v543_v43, %v539_v35 }
  0x33   : > { %1627 = vst [vmem:[#allocation5_spill] sm:$0xff] %v1299_v29  ;;  %v1307_v42 = vmul.f32 %v392_v7, %v1088_v0  ;;  %vm735_vm7 = vcmp.eq.s32.totalorder %v1386_v36, 0  ;;  %vm746_vm9 = vcmp.eq.s32.totalorder %v1386_v36, 15 }
  0x35   : > { %631 = vrot.lane.b32.xlu1 %v584_v10, %s1016_s12  ;;  %629 = vrot.lane.b32.xlu0 %v583_v11, %s1016_s12  ;;  %v1268_v10 = vmul.f32 %v303_v41, %v1088_v0  ;;  %v913_v11 = vld [vmem:[%s1618_s1 + $0x2] ss:$8 sm:$0xf] }
  0x36   : > { %v1315_v9 = vrot.slane %v913_v11, %v1165_v24  ;;  %v1328_v41 = vrot.slane %v913_v11, %v1156_v21  ;;  %v1341_v16 = vrot.slane %v913_v11, %v1159_v22  ;;  %v1344_v50 = vrot.slane %v913_v11, %v1169_v26 }
  0x37   : > { %v1358_v11 = vmul.f32 %v1128_v12, %v1208_v44 }
  0x39   : > { %647 = vrot.lane.b32.xlu1 %v1128_v12, %s1015_s7  ;;  %645 = vrot.lane.b32.xlu0 %v1130_v13, %s1015_s7  ;;  %1629 = vst [vmem:[#allocation7_spill] sm:$0xff] %v1358_v11 }
  0x3d   : > { %651 = vrot.lane.b32.xlu1 %v1136_v14, %s1015_s7  ;;  %649 = vrot.lane.b32.xlu0 %v1138_v15, %s1015_s7 }
  0x41   : > { %671 = vrot.lane.b32.xlu1 %v1128_v12, %s1016_s12  ;;  %669 = vrot.lane.b32.xlu0 %v1130_v13, %s1016_s12  ;;  %v1632_v12 = vrot.slane %v1198_v38, %v1156_v21  ;;  %v1384_v13 = vrot.slane %v919_v23, %v1169_v26 }
  0x45   : > { %675 = vrot.lane.b32.xlu1 %v1136_v14, %s1016_s12  ;;  %673 = vrot.lane.b32.xlu0 %v1138_v15, %s1016_s12 }
  0x8b   : > { %v1180_v31 = vpop.permute.xlu1 %239  ;;  %v1182_v32 = vpop.permute.xlu0 %235 }
  0x8f   : > { %v242_v52 = vpop.permute.xlu1 %241  ;;  %v238_v53 = vpop.permute.xlu0 %237 }
  0x90   : > { %v249_v0 = vsel %vm245_vm0, %v242_v52, %v1182_v32  ;;  %v246_v63 = vsel %vm245_vm0, %v1180_v31, %v242_v52  ;;  %v248_v52 = vsel %vm245_vm0, %v1182_v32, %v238_v53  ;;  %v247_v29 = vsel %vm245_vm0, %v238_v53, %v1180_v31 }
  0x91   : > { %v285_v61 = vmul.f32 %v1214_v46, %v249_v0  ;;  %v288_v6 = vmul.f32 %v1217_v47, %v246_v63  ;;  %v1365_v32 = vrot.slane %v919_v23, %v1159_v22  ;;  %v374_v55 = vmul.f32 %v1631_v30, %v249_v0 }
  0x92   : > { %v377_v44 = vmul.f32 %v1632_v12, %v246_v63  ;;  %v463_v11 = vmul.f32 %v1227_v51, %v249_v0  ;;  %v1380_v31 = vmul.f32 %v1136_v14, %v1193_v37  ;;  %v286_v53 = vmul.f32 %v1250_v60, %v248_v52 }
  0x93   : > { %v592_v33 = vpop.permute.xlu1 %591  ;;  %v590_v34 = vpop.permute.xlu0 %589  ;;  %v316_v30 = vadd.f32 %v1237_v56, %v285_v61  ;;  %v1390_v49 = vmul.f32 %v1230_v54, %v246_v63  ;;  %v287_v0 = vmul.f32 %v1253_v62, %v247_v29  ;;  %v319_v14 = vadd.f32 %v1220_v48, %v288_v6 }
  0x94   : > { %1633 = vst [vmem:[#allocation9_spill] sm:$0xff] %v1380_v31  ;;  %v599_v12 = vsel %vm245_vm0, %v590_v34, %v592_v33  ;;  %v405_v56 = vadd.f32 %v1247_v59, %v374_v55  ;;  %v408_v43 = vadd.f32 %v1244_v58, %v377_v44  ;;  %v494_v61 = vadd.f32 %v1241_v57, %v463_v11 }
  0x95   : > { %v317_v6 = vadd.f32 %v1265_v1, %v286_v53  ;;  %v602_v55 = vmul.f32 %v599_v12, %v1250_v60  ;;  %v318_v1 = vadd.f32 %v1268_v10, %v287_v0  ;;  %v1431_v60 = vmul.f32 %v1281_v5, %v247_v29 }
  0x96   : > { %v1637_v12 = vrot.slane %v1262_v2, 7  ;;  %v1640_v2 = vrot.slane %v1286_v20, %v1156_v21 }
  0x97   : > { %v596_v7 = vpop.permute.xlu1 %595  ;;  %v594_v19 = vpop.permute.xlu0 %593 }
  0x98   : > { %v600_v37 = vsel %vm245_vm0, %v596_v7, %v590_v34  ;;  %v597_v23 = vsel %vm245_vm0, %v594_v19, %v596_v7  ;;  %v598_v35 = vsel %vm245_vm0, %v592_v33, %v594_v19  ;;  %v1634_v34 = vrot.slane %v1198_v38, %v1159_v22 }
  0x99   : > { %v1635_v33 = vrot.slane %v1198_v38, %v1169_v26  ;;  %v601_v58 = vmul.f32 %v600_v37, %v1214_v46  ;;  %v603_v57 = vmul.f32 %v598_v35, %v1253_v62  ;;  %v604_v59 = vmul.f32 %v597_v23, %v1217_v47 }
  0x9a   : > { %v375_v7 = vmul.f32 %v1634_v34, %v248_v52  ;;  %v1428_v46 = vmul.f32 %v1278_v17, %v248_v52  ;;  %v1636_v52 = vrot.slane %v1259_v8, 7  ;;  %v1638_v23 = vrot.slane %v1295_v27, 7 }
  0x9b   : > { %v253_v15 = vpop.permute.xlu1 %252  ;;  %v251_v45 = vpop.permute.xlu0 %250  ;;  %v376_v19 = vmul.f32 %v1635_v33, %v247_v29  ;;  %v621_v37 = vadd.f32 %v1637_v12, %v601_v58  ;;  %v1639_v35 = vrot.slane %v1292_v25, 7  ;;  %v1641_v25 = vrot.slane %v1286_v20, %v1159_v22 }
  0x9c   : > { %v261_v63 = vsel %vm258_vm2, %v251_v45, %v253_v15  ;;  %v622_v0 = vadd.f32 %v1636_v52, %v602_v55 }
  0x9d   : > { %v343_v44 = vmul.f32 %v1315_v9, %v261_v63  ;;  %v432_v53 = vmul.f32 %v415_v3, %v261_v63  ;;  %v521_v47 = vmul.f32 %v1322_v40, %v261_v63  ;;  %v407_v3 = vadd.f32 %v1307_v42, %v376_v19 }
  0x9e   : > { %v624_v63 = vadd.f32 %v1639_v35, %v604_v59 }
  0x9f   : > { %v257_v31 = vpop.permute.xlu1 %256  ;;  %v255_v48 = vpop.permute.xlu0 %254  ;;  %v436_v34 = vadd.f32 %v432_v53, %v405_v56 }
  0xa0   : > { %v262_v11 = vsel %vm258_vm2, %v257_v31, %v251_v45  ;;  %v1424_v38 = vsel %vm258_vm2, %v253_v15, %v255_v48  ;;  %v1436_v45 = vsel %vm258_vm2, %v255_v48, %v257_v31  ;;  %v406_v15 = vadd.f32 %v1304_v39, %v375_v7 }
  0xa1   : > { %v346_v29 = vmul.f32 %v1328_v41, %v262_v11  ;;  %v623_v31 = vadd.f32 %v1638_v23, %v603_v57  ;;  %v344_v48 = vmul.f32 %v1341_v16, %v1424_v38  ;;  %v347_v39 = vadd.f32 %v343_v44, %v316_v30 }
  0xa2   : > { %v345_v8 = vmul.f32 %v1344_v50, %v1436_v45  ;;  %v1456_v7 = vadd.f32 %v521_v47, %v494_v61  ;;  %v435_v27 = vmul.f32 %v1640_v2, %v262_v11  ;;  %v433_v33 = vmul.f32 %v1641_v25, %v1424_v38 }
  0xa3   : > { %v628_v62 = vpop.permute.xlu1 %627  ;;  %v626_v10 = vpop.permute.xlu0 %625  ;;  %v350_v55 = vadd.f32 %v346_v29, %v319_v14  ;;  %v348_v59 = vadd.f32 %v344_v48, %v317_v6  ;;  %v545_v52 = vrot.slane %v347_v39, 7  ;;  %v1642_v14 = vrot.slane %v1286_v20, %v1169_v26 }
  0xa4   : > { %v635_v42 = vsel %vm258_vm2, %v626_v10, %v628_v62  ;;  %v524_v12 = vmul.f32 %v1338_v4, %v262_v11 }
  0xa5   : > { %v637_v30 = vmul.f32 %v635_v42, %v1315_v9  ;;  %v349_v9 = vadd.f32 %v345_v8, %v318_v1  ;;  %v434_v29 = vmul.f32 %v1642_v14, %v1436_v45  ;;  %v548_v48 = vrot.slane %v350_v55, 7 }
  0xa6   : > { %v546_v1 = vrot.slane %v348_v59, 7 }
  0xa7   : > { %v632_v56 = vpop.permute.xlu1 %631  ;;  %v630_v19 = vpop.permute.xlu0 %629  ;;  %v641_v44 = vadd.f32 %v637_v30, %v621_v37  ;;  %v438_v42 = vadd.f32 %v434_v29, %v407_v3  ;;  %v547_v11 = vrot.slane %v349_v9, 7  ;;  %v523_v9 = vmul.f32 %v1384_v13, %v1436_v45 }
  0xa8   : > { %v636_v58 = vsel %vm258_vm2, %v632_v56, %v626_v10  ;;  %v633_v61 = vsel %vm258_vm2, %v630_v19, %v632_v56  ;;  %v634_v57 = vsel %vm258_vm2, %v628_v62, %v630_v19 }
  0xa9   : > { %v640_v53 = vmul.f32 %v636_v58, %v1328_v41  ;;  %v638_v47 = vmul.f32 %v634_v57, %v1341_v16  ;;  %v639_v10 = vmul.f32 %v633_v61, %v1344_v50  ;;  %v695_v23 = vrot.slane %v641_v44, %v1165_v24 }
  0xaa   : > { %v439_v41 = vadd.f32 %v435_v27, %v408_v43  ;;  %v437_v16 = vadd.f32 %v433_v33, %v406_v15  ;;  %v522_v61 = vmul.f32 %v1365_v32, %v1424_v38 }
  0xab   : > { %v644_v62 = vadd.f32 %v640_v53, %v624_v63  ;;  %v642_v6 = vadd.f32 %v638_v47, %v622_v0  ;;  %v648_v37 = vpop.permute.xlu1 %647  ;;  %v646_v35 = vpop.permute.xlu0 %645  ;;  %v643_v39 = vadd.f32 %v639_v10, %v623_v31  ;;  %v708_v8 = vsel %vm689_vm6, %v695_v23, %v545_v52  ;;  %v1643_v53 = vld [vmem:[#allocation3_spill] sm:$0xff]  ;;  %v1644_v47 = vld [vmem:[#allocation2_spill] sm:$0xff]  ;;  %v1645_v10 = vld [vmem:[#allocation4_spill] sm:$0xff] }
  0xac   : > { %v738_v63 = vsel %vm735_vm7, 0.0, %v708_v8  ;;  %v655_v31 = vsel %vm245_vm0, %v646_v35, %v648_v37  ;;  %v663_v52 = vmul.f32 %v1644_v47, %v1643_v53  ;;  %v497_v23 = vadd.f32 %v1645_v10, %v1390_v49 }
  0xad   : > { %v707_v20 = vrot.slane %v644_v62, %v1165_v24  ;;  %v699_v50 = vrot.slane %v642_v6, %v1165_v24  ;;  %v703_v0 = vrot.slane %v643_v39, %v1165_v24  ;;  %v1488_v2 = vadd.f32 %v738_v63, %v436_v34  ;;  %v1646_v62 = vld [vmem:[#allocation5_spill] sm:$0xff] }
  0xae   : > { %v658_v14 = vmul.f32 %v655_v31, %v1278_v17  ;;  %v495_v6 = vadd.f32 %v1646_v62, %v1428_v46  ;;  %v1647_v17 = vld [vmem:[#allocation6_spill] sm:$0xff]  ;;  %v528_v49 = vadd.f32 %v524_v12, %v497_v23  ;;  %v1649_v46 = vld [vmem:[#allocation7_spill] sm:$0xff] }
  0xaf   : > { %v711_v43 = vsel %vm689_vm6, %v707_v20, %v548_v48  ;;  %v709_v15 = vsel %vm689_vm6, %v699_v50, %v546_v1  ;;  %v652_v27 = vpop.permute.xlu1 %651  ;;  %v650_v25 = vpop.permute.xlu0 %649  ;;  %v710_v33 = vsel %vm689_vm6, %v703_v0, %v547_v11  ;;  %v1650_v50 = vld [vmem:[#allocation9_spill] sm:$0xff] }
  0xb0   : > { %v741_v3 = vsel %vm735_vm7, 0.0, %v711_v43  ;;  %v739_v34 = vsel %vm735_vm7, 0.0, %v709_v15  ;;  %v656_v30 = vsel %vm245_vm0, %v652_v27, %v646_v35  ;;  %v740_v19 = vsel %vm735_vm7, 0.0, %v710_v33 }
  0xb1   : > { %v1504_v56 = vadd.f32 %v741_v3, %v439_v41  ;;  %v1508_v55 = vadd.f32 %v739_v34, %v437_v16  ;;  %v657_v58 = vmul.f32 %v656_v30, %v1227_v51  ;;  %v1513_v57 = vadd.f32 %v740_v19, %v438_v42 }
  0xb2   : > { %v653_v59 = vsel %vm245_vm0, %v650_v25, %v652_v27  ;;  %v654_v44 = vsel %vm245_vm0, %v648_v37, %v650_v25  ;;  %v496_v35 = vadd.f32 %v1647_v17, %v1431_v60  ;;  %v549_v16 = vrot.slane %v1456_v7, 1  ;;  %v757_v60 = vld [vmem:[%s1619_s2] sm:$0xf] }
  0xb3   : > { %v659_v51 = vmul.f32 %v654_v44, %v1281_v5  ;;  %v672_v29 = vpop.permute.xlu1 %671  ;;  %v670_v38 = vpop.permute.xlu0 %669  ;;  %v660_v37 = vmul.f32 %v653_v59, %v1230_v54  ;;  %v1648_v5 = vld [vmem:[#allocation8_spill] sm:$0xff]  ;;  %v526_v39 = vadd.f32 %v522_v61, %v495_v6  ;;  %v666_v1 = vadd.f32 %v1649_v46, %v658_v14 }
  0xb4   : > { %v679_v45 = vsel %vm258_vm2, %v670_v38, %v672_v29  ;;  %v665_v41 = vadd.f32 %v1648_v5, %v657_v58  ;;  %v527_v54 = vadd.f32 %v523_v9, %v496_v35  ;;  %v762_v25 = vrot.slane %v757_v60, %v1165_v24 }
  0xb5   : > { %v681_v48 = vmul.f32 %v679_v45, %v1322_v40  ;;  %v667_v8 = vadd.f32 %v663_v52, %v659_v51  ;;  %v783_v40 = vld [vmem:[%s1620_s3] sm:$0xf]  ;;  %v668_v42 = vadd.f32 %v1650_v50, %v660_v37  ;;  %v774_v33 = vrot.slane %v757_v60, %v1156_v21 }
  0xb6   : > { %v788_v3 = vrot.slane %v783_v40, %v1165_v24  ;;  %v552_v19 = vrot.slane %v528_v49, 1  ;;  %v551_v58 = vrot.slane %v527_v54, 1  ;;  %v800_v47 = vrot.slane %v783_v40, %v1156_v21 }
  0xb7   : > { %v685_v7 = vadd.f32 %v681_v48, %v665_v41  ;;  %v676_v12 = vpop.permute.xlu1 %675  ;;  %v674_v20 = vpop.permute.xlu0 %673  ;;  %v766_v52 = vrot.slane %v757_v60, %v1159_v22  ;;  %v770_v9 = vrot.slane %v757_v60, %v1169_v26  ;;  %v792_v14 = vrot.slane %v783_v40, %v1159_v22 }
  0xb8   : > { %v680_v11 = vsel %vm258_vm2, %v676_v12, %v670_v38  ;;  %v677_v63 = vsel %vm258_vm2, %v674_v20, %v676_v12  ;;  %v678_v0 = vsel %vm258_vm2, %v672_v29, %v674_v20 }
  0xb9   : > { %v718_v43 = vrot.slane %v685_v7, %v1165_v24  ;;  %v684_v15 = vmul.f32 %v680_v11, %v1338_v4  ;;  %v682_v31 = vmul.f32 %v678_v0, %v1365_v32  ;;  %v683_v27 = vmul.f32 %v677_v63, %v1384_v13 }
  0xba   : > { %v550_v32 = vrot.slane %v526_v39, 1 }
  0xbb   : > { %v731_v28 = vsel %vm712_vm8, %v718_v43, %v549_v16  ;;  %v688_v34 = vadd.f32 %v684_v15, %v668_v42  ;;  %v686_v30 = vadd.f32 %v682_v31, %v666_v1  ;;  %v687_v4 = vadd.f32 %v683_v27, %v667_v8 }
  0xbc   : > { %v749_v13 = vsel %vm746_vm9, 0.0, %v731_v28 }
  0xbd   : > { %v753_v61 = vadd.f32 %v749_v13, %v1488_v2  ;;  %v730_v59 = vrot.slane %v688_v34, %v1165_v24  ;;  %v722_v44 = vrot.slane %v686_v30, %v1165_v24  ;;  %v726_v53 = vrot.slane %v687_v4, %v1165_v24 }
  0xbe   : > { %v796_v24 = vrot.slane %v783_v40, %v1169_v26 }
  0xbf   : > { %v779_v51 = vmul.f32 %v762_v25, %v753_v61  ;;  %v734_v29 = vsel %vm712_vm8, %v730_v59, %v552_v19  ;;  %v732_v2 = vsel %vm712_vm8, %v722_v44, %v550_v32  ;;  %v733_v38 = vsel %vm712_vm8, %v726_v53, %v551_v58 }
  0xc0   : > { %v752_v21 = vsel %vm746_vm9, 0.0, %v734_v29  ;;  %v750_v10 = vsel %vm746_vm9, 0.0, %v732_v2  ;;  %v751_v22 = vsel %vm746_vm9, 0.0, %v733_v38 }
  0xc1   : > { %v805_v23 = vadd.f32 %v788_v3, %v779_v51  ;;  %v756_v62 = vadd.f32 %v752_v21, %v1504_v56  ;;  %v754_v6 = vadd.f32 %v750_v10, %v1508_v55  ;;  %v755_v37 = vadd.f32 %v751_v22, %v1513_v57 }
  0xc3   : > { %v809_v18 = vmax.f32 %v805_v23, 0.0  ;;  %v782_v45 = vmul.f32 %v774_v33, %v756_v62  ;;  %v780_v26 = vmul.f32 %v766_v52, %v754_v6  ;;  %v781_v17 = vmul.f32 %v770_v9, %v755_v37 }
  0xc5   : > { %813 = vst [vmem:[%s222_s28] sm:$0xff] %v809_v18  ;;  %v808_v35 = vadd.f32 %v800_v47, %v782_v45  ;;  %v806_v5 = vadd.f32 %v792_v14, %v780_v26  ;;  %v807_v36 = vadd.f32 %v796_v24, %v781_v17 }
  0xc7   : > { %v812_v41 = vmax.f32 %v808_v35, 0.0  ;;  %v810_v48 = vmax.f32 %v806_v5, 0.0  ;;  %v811_v16 = vmax.f32 %v807_v36, 0.0 }
  0xc9   : > { %816 = vst [vmem:[%s222_s28 + $0x18] sm:$0xff] %v812_v41  ;;  %814 = vst [vmem:[%s222_s28 + $0x8] sm:$0xff] %v810_v48 }
  0xca   : > { %815 = vst [vmem:[%s222_s28 + $0x10] sm:$0xff] %v811_v16 }
  0xcb PF: > { %s14_s19 = sadd.s32 1, %s1013_s19   ;;  %s1651_s15 = smov %s1005_s17 }
  0xcc   : > { %p11_p9 = scmp.ge.s32.totalorder %s14_s19, 6   ;;  %s1652_s16 = smov %s1009_s18 }
  0xcd   : > { %s1653_s17 = smov %s1656_s20  ;;  %s1654_s18 = smov %s1660_s21 }
  0xce   :  { %13 = sbr.rel (!%p11_p9) target bundleno = 3 (0x3), region = 77 }

</bundles_post_ra>
